<compile_context>
chip_gen: v6e
topology: v6e:2x2x1
jax: 0.10.0
libtpu: 0.0.40
codegen_flags: <defaults>
</compile_context>

<pallas_src>
import jax
import jax.numpy as jnp
from jax.experimental import pallas as pl
from jax.experimental.pallas import tpu as pltpu


def _actor_kernel(scale_ref,
                  x_ref, w1_ref, b1_ref, w2_ref, b2_ref, w3_ref, b3_ref,
                  o_ref):
    """One batch tile of the TD3 actor MLP (bf16 MXU operands, f32 epilogue)."""
    max_action = scale_ref[0, 0]

    # Layer 1: relu(x @ W1 + b1)
    h1 = jnp.dot(x_ref[...], w1_ref[...], preferred_element_type=jnp.float32)
    h1 = jnp.maximum(h1 + b1_ref[...], 0.0)

    # Layer 2: relu(h1 @ W2 + b2)   (cast MXU operand back to bf16)
    h2 = jnp.dot(h1.astype(w2_ref.dtype), w2_ref[...],
                 preferred_element_type=jnp.float32)
    h2 = jnp.maximum(h2 + b2_ref[...], 0.0)

    # Layer 3: max_action * tanh(h2 @ W3 + b3)
    h3 = jnp.dot(h2.astype(w3_ref.dtype), w3_ref[...],
                 preferred_element_type=jnp.float32)
    o_ref[...] = (max_action * jnp.tanh(h3 + b3_ref[...])).astype(o_ref.dtype)


def actor_forward(x, params, max_action, *, tile_b=256,
                  compute_dtype=jnp.bfloat16):
    """x: [B, state_dim] float32. Returns [B, action_dim] float32."""
    w1, b1, w2, b2, w3, b3 = params
    B, state_dim = x.shape
    action_dim = w3.shape[1]

    # bf16 MXU operands; biases stay f32 for the f32 epilogue.
    xc = x.astype(compute_dtype)
    w1c = w1.astype(compute_dtype)
    w2c = w2.astype(compute_dtype)
    w3c = w3.astype(compute_dtype)
    b1f = b1.astype(jnp.float32)
    b2f = b2.astype(jnp.float32)
    b3f = b3.astype(jnp.float32)

    # Batch tiling. If the whole batch fits in one tile, use the exact batch
    # size (a block equal to the full array dim is always layout-legal, even
    # when B is not a multiple of 8). Otherwise use a tile_b-row block
    # (multiple of 8 sublanes / MXU rows); the partial trailing block is
    # handled by Pallas padding.
    if B <= tile_b:
        tile_b = B
    grid = (pl.cdiv(B, tile_b),)

    # max_action as a (1,1) SMEM scalar -> no recompile per value.
    scale = jnp.full((1, 1), max_action, dtype=jnp.float32)

    # Weights / biases: constant index_map => one DMA total, resident in VMEM
    # across all batch tiles.
    resident = lambda a: pl.BlockSpec(a.shape, lambda i: (0, 0))

    return pl.pallas_call(
        _actor_kernel,
        out_shape=jax.ShapeDtypeStruct((B, action_dim), jnp.float32),
        grid=grid,
        in_specs=[
            pl.BlockSpec(memory_space=pltpu.MemorySpace.SMEM),       # max_action
            pl.BlockSpec((tile_b, state_dim), lambda i: (i, 0)),     # x tile
            resident(w1c), resident(b1f),
            resident(w2c), resident(b2f),
            resident(w3c), resident(b3f),
        ],
        out_specs=pl.BlockSpec((tile_b, action_dim), lambda i: (i, 0)),
        compiler_params=pltpu.CompilerParams(
            dimension_semantics=("parallel",),   # shard batch tiles across TCs
        ),
    )(scale, xc, w1c, b1f, w2c, b2f, w3c, b3f)


def init_actor_params(key, state_dim, h_size, action_dim):
    """Deterministic init mimicking PyTorch nn.Linear default
    (U[-1/sqrt(fan_in), 1/sqrt(fan_in)]).  Weights are stored as
    [in_features, out_features] (transposed vs torch)."""
    ks = jax.random.split(key, 6)

    def lin(kw, kb, fan_in, fan_out):
        bound = 1.0 / jnp.sqrt(fan_in)
        w = jax.random.uniform(kw, (fan_in, fan_out), jnp.float32, -bound, bound)
        b = jax.random.uniform(kb, (1, fan_out), jnp.float32, -bound, bound)
        return w, b

    w1, b1 = lin(ks[0], ks[1], state_dim, h_size)
    w2, b2 = lin(ks[2], ks[3], h_size, h_size)
    w3, b3 = lin(ks[4], ks[5], h_size, action_dim)
    return (w1, b1, w2, b2, w3, b3)


def _reference_forward(x, params, max_action, compute_dtype=jnp.bfloat16):
    """Pure-JAX reference using the same bf16-operand / f32-accumulate recipe."""
    w1, b1, w2, b2, w3, b3 = params
    cd = compute_dtype
    h = jnp.dot(x.astype(cd), w1.astype(cd),
                preferred_element_type=jnp.float32) + b1
    h = jnp.maximum(h, 0.0)
    h = jnp.dot(h.astype(cd), w2.astype(cd),
                preferred_element_type=jnp.float32) + b2
    h = jnp.maximum(h, 0.0)
    h = jnp.dot(h.astype(cd), w3.astype(cd),
                preferred_element_type=jnp.float32) + b3
    return max_action * jnp.tanh(h)


if __name__ == "__main__":
    # Small, module-consistent shapes.
    batch = 2
    state_dim = 16
    h_size = 32
    action_dim = 2
    max_action = 1.0

    key = jax.random.PRNGKey(0)
    k_x, k_p, k_x2 = jax.random.split(key, 3)

    params = init_actor_params(k_p, state_dim, h_size, action_dim)

    # --- small-batch check (single tile, block == full batch) ---
    x = jax.random.normal(k_x, (batch, state_dim), dtype=jnp.float32)
    out = actor_forward(x, params, max_action)
    jax.block_until_ready(out)
    ref = _reference_forward(x, params, max_action)
    assert out.shape == (batch, action_dim)
    assert jnp.allclose(out, ref, atol=1e-2, rtol=1e-2)

    # --- tiled-path check (grid > 1, partial trailing block) ---
    big_batch = 320
    x_big = jax.random.normal(k_x2, (big_batch, state_dim), dtype=jnp.float32)
    out_big = actor_forward(x_big, params, max_action)
    jax.block_until_ready(out_big)
    ref_big = _reference_forward(x_big, params, max_action)
    assert out_big.shape == (big_batch, action_dim)
    assert jnp.allclose(out_big, ref_big, atol=1e-2, rtol=1e-2)

    print("KERNEL_OK")
</pallas_src>

<mosaic_0001>
module attributes {stable_mosaic.version = 11 : i64} {
  func.func @_actor_kernel(%arg0: i32, %arg1: memref<1x1xf32, #tpu.memory_space<smem>>, %arg2: memref<2x16xbf16, #tpu.memory_space<vmem>>, %arg3: memref<16x32xbf16, #tpu.memory_space<vmem>>, %arg4: memref<1x32xf32, #tpu.memory_space<vmem>>, %arg5: memref<32x32xbf16, #tpu.memory_space<vmem>>, %arg6: memref<1x32xf32, #tpu.memory_space<vmem>>, %arg7: memref<32x2xbf16, #tpu.memory_space<vmem>>, %arg8: memref<1x2xf32, #tpu.memory_space<vmem>>, %arg9: memref<2x2xf32, #tpu.memory_space<vmem>>) attributes {dimension_semantics = [#tpu.dimension_semantics<parallel>], iteration_bounds = array<i64: 1>, scalar_prefetch = 0 : i64, scratch_operands = 0 : i64, tpu.core_type = #tpu.core_type<tc>, window_params = [{transform_indices = @transform_0, window_bounds = array<i64: 1, 1>}, {transform_indices = @transform_1, window_bounds = array<i64: 2, 16>}, {pipeline_mode = #tpu.pipeline_mode<synchronous>, transform_indices = @transform_2, window_bounds = array<i64: 16, 32>}, {pipeline_mode = #tpu.pipeline_mode<synchronous>, transform_indices = @transform_3, window_bounds = array<i64: 1, 32>}, {pipeline_mode = #tpu.pipeline_mode<synchronous>, transform_indices = @transform_4, window_bounds = array<i64: 32, 32>}, {pipeline_mode = #tpu.pipeline_mode<synchronous>, transform_indices = @transform_5, window_bounds = array<i64: 1, 32>}, {pipeline_mode = #tpu.pipeline_mode<synchronous>, transform_indices = @transform_6, window_bounds = array<i64: 32, 2>}, {pipeline_mode = #tpu.pipeline_mode<synchronous>, transform_indices = @transform_7, window_bounds = array<i64: 1, 2>}, {transform_indices = @transform_8, window_bounds = array<i64: 2, 2>}]} {
    %c0 = arith.constant 0 : index
    %c0_0 = arith.constant 0 : index
    %0 = memref.load %arg1[%c0, %c0_0] : memref<1x1xf32, #tpu.memory_space<smem>>
    %c0_1 = arith.constant 0 : index
    %c0_2 = arith.constant 0 : index
    %1 = vector.load %arg2[%c0_1, %c0_2] : memref<2x16xbf16, #tpu.memory_space<vmem>>, vector<2x16xbf16>
    %c0_3 = arith.constant 0 : index
    %c0_4 = arith.constant 0 : index
    %2 = vector.load %arg3[%c0_3, %c0_4] : memref<16x32xbf16, #tpu.memory_space<vmem>>, vector<16x32xbf16>
    %cst = arith.constant dense<0.000000e+00> : vector<2x32xf32>
    %3 = tpu.matmul %1, %2, %cst {dimension_numbers = #tpu.dot_dimension_numbers<[1], [0], [0], [1], [0, 0, 1, 1], [], []>} : vector<2x16xbf16>, vector<16x32xbf16>, vector<2x32xf32> -> vector<2x32xf32>
    %c0_5 = arith.constant 0 : index
    %c0_6 = arith.constant 0 : index
    %4 = vector.load %arg4[%c0_5, %c0_6] : memref<1x32xf32, #tpu.memory_space<vmem>>, vector<1x32xf32>
    %5 = vector.broadcast %4 : vector<1x32xf32> to vector<2x32xf32>
    %6 = arith.addf %3, %5 : vector<2x32xf32>
    %cst_7 = arith.constant 0.000000e+00 : f32
    %7 = vector.broadcast %cst_7 : f32 to vector<2x32xf32>
    %8 = arith.maximumf %6, %7 : vector<2x32xf32>
    %9 = arith.truncf %8 : vector<2x32xf32> to vector<2x32xbf16>
    %c0_8 = arith.constant 0 : index
    %c0_9 = arith.constant 0 : index
    %10 = vector.load %arg5[%c0_8, %c0_9] : memref<32x32xbf16, #tpu.memory_space<vmem>>, vector<32x32xbf16>
    %cst_10 = arith.constant dense<0.000000e+00> : vector<2x32xf32>
    %11 = tpu.matmul %9, %10, %cst_10 {dimension_numbers = #tpu.dot_dimension_numbers<[1], [0], [0], [1], [0, 0, 1, 1], [], []>} : vector<2x32xbf16>, vector<32x32xbf16>, vector<2x32xf32> -> vector<2x32xf32>
    %c0_11 = arith.constant 0 : index
    %c0_12 = arith.constant 0 : index
    %12 = vector.load %arg6[%c0_11, %c0_12] : memref<1x32xf32, #tpu.memory_space<vmem>>, vector<1x32xf32>
    %13 = vector.broadcast %12 : vector<1x32xf32> to vector<2x32xf32>
    %14 = arith.addf %11, %13 : vector<2x32xf32>
    %cst_13 = arith.constant 0.000000e+00 : f32
    %15 = vector.broadcast %cst_13 : f32 to vector<2x32xf32>
    %16 = arith.maximumf %14, %15 : vector<2x32xf32>
    %17 = arith.truncf %16 : vector<2x32xf32> to vector<2x32xbf16>
    %c0_14 = arith.constant 0 : index
    %c0_15 = arith.constant 0 : index
    %18 = vector.load %arg7[%c0_14, %c0_15] : memref<32x2xbf16, #tpu.memory_space<vmem>>, vector<32x2xbf16>
    %cst_16 = arith.constant dense<0.000000e+00> : vector<2x2xf32>
    %19 = tpu.matmul %17, %18, %cst_16 {dimension_numbers = #tpu.dot_dimension_numbers<[1], [0], [0], [1], [0, 0, 1, 1], [], []>} : vector<2x32xbf16>, vector<32x2xbf16>, vector<2x2xf32> -> vector<2x2xf32>
    %c0_17 = arith.constant 0 : index
    %c0_18 = arith.constant 0 : index
    %20 = vector.load %arg8[%c0_17, %c0_18] : memref<1x2xf32, #tpu.memory_space<vmem>>, vector<1x2xf32>
    %21 = vector.broadcast %20 : vector<1x2xf32> to vector<2x2xf32>
    %22 = arith.addf %19, %21 : vector<2x2xf32>
    %23 = math.tanh %22 : vector<2x2xf32>
    %24 = vector.broadcast %0 : f32 to vector<2x2xf32>
    %25 = arith.mulf %24, %23 : vector<2x2xf32>
    %c0_19 = arith.constant 0 : index
    %c0_20 = arith.constant 0 : index
    %26 = vector.load %arg9[%c0_19, %c0_20] : memref<2x2xf32, #tpu.memory_space<vmem>>, vector<2x2xf32>
    tpu.vector_store %arg9[%c0_19, %c0_20], %25 {strides = array<i32>} : memref<2x2xf32, #tpu.memory_space<vmem>>, vector<2x2xf32>,
    return
  }
  func.func @transform_0(%arg0: i32) -> (i32, i32) {
    %c0_i32 = arith.constant 0 : i32
    %c0_i32_0 = arith.constant 0 : i32
    %c0_i32_1 = arith.constant 0 : i32
    return %c0_i32, %c0_i32_0 : i32, i32
  }
  func.func @transform_1(%arg0: i32) -> (i32, i32) {
    %c0_i32 = arith.constant 0 : i32
    %c0_i32_0 = arith.constant 0 : i32
    return %arg0, %c0_i32 : i32, i32
  }
  func.func @transform_2(%arg0: i32) -> (i32, i32) {
    %c0_i32 = arith.constant 0 : i32
    %c0_i32_0 = arith.constant 0 : i32
    %c0_i32_1 = arith.constant 0 : i32
    return %c0_i32, %c0_i32_0 : i32, i32
  }
  func.func @transform_3(%arg0: i32) -> (i32, i32) {
    %c0_i32 = arith.constant 0 : i32
    %c0_i32_0 = arith.constant 0 : i32
    %c0_i32_1 = arith.constant 0 : i32
    return %c0_i32, %c0_i32_0 : i32, i32
  }
  func.func @transform_4(%arg0: i32) -> (i32, i32) {
    %c0_i32 = arith.constant 0 : i32
    %c0_i32_0 = arith.constant 0 : i32
    %c0_i32_1 = arith.constant 0 : i32
    return %c0_i32, %c0_i32_0 : i32, i32
  }
  func.func @transform_5(%arg0: i32) -> (i32, i32) {
    %c0_i32 = arith.constant 0 : i32
    %c0_i32_0 = arith.constant 0 : i32
    %c0_i32_1 = arith.constant 0 : i32
    return %c0_i32, %c0_i32_0 : i32, i32
  }
  func.func @transform_6(%arg0: i32) -> (i32, i32) {
    %c0_i32 = arith.constant 0 : i32
    %c0_i32_0 = arith.constant 0 : i32
    %c0_i32_1 = arith.constant 0 : i32
    return %c0_i32, %c0_i32_0 : i32, i32
  }
  func.func @transform_7(%arg0: i32) -> (i32, i32) {
    %c0_i32 = arith.constant 0 : i32
    %c0_i32_0 = arith.constant 0 : i32
    %c0_i32_1 = arith.constant 0 : i32
    return %c0_i32, %c0_i32_0 : i32, i32
  }
  func.func @transform_8(%arg0: i32) -> (i32, i32) {
    %c0_i32 = arith.constant 0 : i32
    %c0_i32_0 = arith.constant 0 : i32
    return %arg0, %c0_i32 : i32, i32
  }
}

</mosaic_0001>

<bundles_post_ra>
// kernel: tpu_custom_call.1
= control target key start
LH: loop header
LB: loop body
LE: loop exit
PB: predicated region body
PF: predicated region fallthrough
CT: control target
= control target key end

     0   :  { %14 = vsyncpa [#allocation4], 0  ;;  %s477_s0 = inlined_call_operand.<no memory space> [shape: f32[1,1], index: 0, kind: input, shape index: {}]   ;;  %s478_s1 = inlined_call_operand.hbm [shape: bf16[2,16], index: 1, kind: input, shape index: {}]   ;;  %s479_s2 = inlined_call_operand.vmem [shape: bf16[16,32], index: 2, kind: input, shape index: {}]   ;;  %s480_s3 = inlined_call_operand.hbm [shape: f32[1,32], index: 3, kind: input, shape index: {}]   ;;  %s481_s4 = inlined_call_operand.vmem [shape: bf16[32,32], index: 4, kind: input, shape index: {}]   ;;  %s482_s5 = inlined_call_operand.vmem [shape: f32[1,32], index: 5, kind: input, shape index: {}]   ;;  %s483_s6 = inlined_call_operand.vmem [shape: bf16[32,2], index: 6, kind: input, shape index: {}]   ;;  %s484_s7 = inlined_call_operand.vmem [shape: f32[1,2], index: 7, kind: input, shape index: {}]   ;;  %s485_s8 = inlined_call_operand.hbm [shape: f32[2,2], index: 8, kind: output, shape index: {}]  }
   0x1   :  { %15 = vsyncpa [#allocation7], 0 }
   0x2   :  { %16 = vsyncpa [#allocation5], 0  ;;  %s394_s27 = smov [#allocation3]   ;;  %s395_s29 = smov [#allocation6]  }
   0x3   :  { %s25_s28 = sshll.u32 %s394_s27, 4  ;;  %s37_s30 = sshll.u32 %s395_s29, 4  ;;  %s26_s28 = int_to_ptr.vmem [resolvable:$true] %s25_s28  ;;  %s38_s30 = int_to_ptr.vmem [resolvable:$true] %s37_s30 }
   0x4   :  { %s336_s9 = scalar_lea.vmem %s26_s28, 16  ;;  %s340_s10 = scalar_lea.vmem %s26_s28, 32 }
   0x5   :  { %p337_p0 = scmp.ne.s32.totalorder %s26_s28, %s336_s9  ;;  %p341_p1 = scmp.lt.s32.totalorder %s26_s28, %s26_s28 }
   0x6   :  { %p342_p2 = scmp.lt.s32.totalorder %s340_s10, %s336_s9 }
   0x8   :  { %p343_p3 = por %p342_p2, %p341_p1 }
   0xa   :  { %p344_p4 = pnand %p343_p3, %p337_p0 }
   0xc   :  { %347 = shalt.err (!%p344_p4)
}
   0xd   :  { %28 = dma.hbm_to_vmem [thread:$0]  %s478_s1, 16, %s26_s28, [#allocation4]  }
   0xe   :  { %s356_s13 = scalar_lea.vmem %s38_s30, 16  ;;  %s360_s14 = scalar_lea.vmem %s38_s30, 32 }
   0xf   :  { %p357_p5 = scmp.ne.s32.totalorder %s38_s30, %s356_s13  ;;  %p361_p6 = scmp.lt.s32.totalorder %s38_s30, %s38_s30 }
  0x10   :  { %p362_p7 = scmp.lt.s32.totalorder %s360_s14, %s356_s13 }
  0x12   :  { %p363_p8 = por %p362_p7, %p361_p6 }
  0x14   :  { %p364_p9 = pnand %p363_p8, %p357_p5 }
  0x16   :  { %367 = shalt.err (!%p364_p9)
}
  0x17   :  { %40 = dma.hbm_to_vmem [thread:$0]  %s480_s3, 16, %s38_s30, [#allocation7]  }
  0x18   :  { %388 = dma.done.wait [#allocation4], 16  }
  0x19   :  { %389 = vsyncadd [#allocation4], 4294967280 }
  0x1a   :  { %390 = dma.done.wait [#allocation7], 16  }
  0x1b   :  { %391 = vsyncadd [#allocation7], 4294967280  ;;  %v396_v0 = vmov 0.0   ;;  %vm397_vm0 = vmmov 0   ;;  %v321_v1 = vld [vmem:[%s479_s2] sm:$0xff]   ;;  %vm73_vm1 = vcmask 130048   ;;  %v255_v29 = vstv %s477_s0 }
  0x1c   :  { %294 = vmatprep.subr.bf16.mxu0 %v396_v0  ;;  %296 = vmatprep.mubr.msk.bf16.mxu0 %vm397_vm0, %v396_v0  ;;  %v57_v2 = vld [vmem:[#allocation3] sm:$0x1]  ;;  %v322_v3 = vld [vmem:[%s481_s4 + $0x8] sm:$0xff]   ;;  %v275_v6 = vld [vmem:[#allocation6] ss:$0 sm:$0xff]  ;;  %vm142_vm2 = vcmask 261120  }
  0x1d   :  { %300 = vmatprep.subr.bf16.mxu1 %v396_v0  ;;  %304 = vmatprep.mubr.msk.bf16.mxu1 %vm397_vm0, %v396_v0  ;;  %v323_v4 = vld [vmem:[%s481_s4] sm:$0xff]   ;;  %v324_v5 = vld [vmem:[%s483_s6 + $0x8] sm:$0xff]   ;;  %s398_s27 = smov [#allocation8]   ;;  %vm257_vm3 = vcmask 9216  }
  0x1e   :  { %295 = vmatpush3.bf16.msra.mxu0 %v321_v1  ;;  %301 = vmatpush3.bf16.msra.mxu1 %v322_v3  ;;  %v325_v14 = vld [vmem:[%s483_s6] sm:$0xff]   ;;  %s265_s28 = sshll.u32 %s398_s27, 4  ;;  %s266_s28 = int_to_ptr.vmem [resolvable:$true] %s265_s28 }
  0x1f   :  { %308 = vmatprep.subr.bf16.mxu0 %v396_v0  ;;  %302 = vmatprep.subr.bf16.mxu1 %v396_v0  ;;  %v278_v15 = vld [vmem:[%s482_s5] ss:$0 sm:$0xff]  ;;  %s368_s29 = scalar_lea.vmem %s266_s28, 32  ;;  %p373_p11 = scmp.lt.s32.totalorder %s266_s28, %s266_s28 }
  0x20   :  { %v282_v23 = vld [vmem:[%s484_s7] ss:$0 sm:$0xff]  ;;  %p369_p10 = scmp.ne.s32.totalorder %s266_s28, %s368_s29  ;;  %p374_p12 = scmp.lt.s32.totalorder %s368_s29, %s368_s29 }
  0x21   :  { %297 = vmatmul.mubr.msk.bf16.vlgmr.msra.gmra.mxu0 %vm73_vm1, %v57_v2 }
  0x22   :  { %312 = vmatprep.mubr.msk.bf16.mxu0 %vm397_vm0, %v396_v0  ;;  %303 = vmatpush3.bf16.msra.mxu1 %v323_v4  ;;  %p375_p13 = por %p374_p12, %p373_p11 }
  0x23   :  { %309 = vmatpush3.bf16.msra.mxu0 %v324_v5 }
  0x24   :  { %310 = vmatprep.subr.bf16.mxu0 %v396_v0  ;;  %p376_p0 = pnand %p375_p13, %p369_p10 }
  0x27   :  { %311 = vmatpush3.bf16.msra.mxu0 %v325_v14 }
  0xe1   :  { %v111_v7 = vpop.f32.mrf.mxu0 }
  0xe2   :  { %v112_v8 = vadd.f32 %v275_v6, %v111_v7 }
  0xe3   :  { %v298_v9 = vpop.f32.mrf.mxu0 }
  0xe4   :  { %v117_v10 = vmax.f32 %v112_v8, 0.0 }
  0xe5   :  { %v114_v11 = vpop.f32.mrf.mxu0 }
  0xe6   :  { %v118_v12 = vpack.c.bf16 %v117_v10, %v117_v10 }
  0xe7   :  { %v299_v13 = vpop.f32.mrf.mxu0 }
  0xe8   :  { %305 = vmatmul.mubr.msk.bf16.vlgmr.msra.gmra.mxu1 %vm142_vm2, %v118_v12 }
 0x1a8   :  { %v180_v16 = vpop.f32.mrf.mxu1 }
 0x1a9   :  { %v181_v17 = vadd.f32 %v278_v15, %v180_v16 }
 0x1aa   :  { %v306_v18 = vpop.f32.mrf.mxu1 }
 0x1ab   :  { %v186_v19 = vmax.f32 %v181_v17, 0.0 }
 0x1ac   :  { %v183_v20 = vpop.f32.mrf.mxu1 }
 0x1ad   :  { %v187_v21 = vpack.c.bf16 %v186_v19, %v186_v19 }
 0x1ae   :  { %v307_v22 = vpop.f32.mrf.mxu1 }
 0x1af   :  { %313 = vmatmul.mubr.msk.bf16.vlgmr.msra.gmra.mxu0 %vm142_vm2, %v187_v21 }
 0x26f   :  { %v248_v24 = vpop.f32.mrf.mxu0 }
 0x270   :  { %v249_v25 = vadd.f32 %v282_v23, %v248_v24 }
 0x271   :  { %v314_v26 = vpop.f32.mrf.mxu0 }
 0x272   :  { %326 = vtanh.f32 %v249_v25 }
 0x273   :  { %v251_v27 = vpop.f32.mrf.mxu0 }
 0x275   :  { %v315_v28 = vpop.f32.mrf.mxu0 }
 0x27f   :  { %v327_v30 = vpop.eup %326 }
 0x280   :  { %v256_v31 = vmul.f32 %v327_v30, %v255_v29 }
 0x282   :  { %258 = vst.msk [vmem:[#allocation8] sm:$0x3] %vm257_vm3, %v256_v31 }
 0x283   :  { %379 = shalt.err (!%p376_p0)
}
 0x284   :  { %268 = dma.vmem_to_hbm [thread:$0]  %s266_s28, 32, %s485_s8, [#allocation5]  }
 0x285   :  { %392 = dma.done.wait [#allocation5], 32  }
 0x286   :  { %393 = vsyncadd [#allocation5], 4294967264 }
 0x287   :  { %272 = vsyncpa [#allocation4], 1 }
 0x288   :  { %273 = vsyncpa [#allocation7], 1 }
 0x289   :  { %274 = vsyncpa [#allocation5], 1 }

</bundles_post_ra>
